<compile_context>
chip_gen: v5e
topology: v5e:2x2
jax: 0.10.0
libtpu: 0.0.40
codegen_flags: <defaults>
</compile_context>

<pallas_src>
import jax
import jax.numpy as jnp
from jax.experimental import pallas as pl
from jax.experimental.pallas import tpu as pltpu

LN_EPS = 1e-5
BN_EPS = 1e-5


# --------------------------------------------------------------------------
# generation-aware VMEM budget
# --------------------------------------------------------------------------
def _vmem_limit_bytes():
    try:
        cap = int(pltpu.get_tpu_info().vmem_capacity_bytes)
    except Exception:                      # pragma: no cover - conservative fallback
        cap = 64 * 1024 * 1024
    # leave headroom for compiler scratch / pipeline slack; cap at 112 MiB.
    return max(16 * 1024 * 1024, min((cap * 3) // 4, 112 * 1024 * 1024))


# --------------------------------------------------------------------------
# stage 1: LayerNorm -> 1x1(D->2C) -> GLU -> depthwise conv, + per-block stats
# --------------------------------------------------------------------------
def _stage1_kernel(x_ref, w1a_ref, w1g_ref, b1a_ref, b1g_ref, dw_ref, db_ref,
                   act_ref, sum_ref, ssq_ref, pad_ref):
    bb, T, D = x_ref.shape
    K, C = dw_ref.shape
    pad = (K - 1) // 2
    rows = bb * T

    # ---- LayerNorm over feature dim D (affine folded into w1a/w1g/b1a/b1g) ----
    x = x_ref[...].astype(jnp.float32).reshape(rows, D)
    d = x - jnp.mean(x, axis=-1, keepdims=True)
    var = jnp.mean(d * d, axis=-1, keepdims=True)
    xn = (d * jax.lax.rsqrt(var + LN_EPS)).astype(jnp.bfloat16)   # bf16 at the MXU

    # ---- 1x1 conv D -> 2C as two lane-aligned MXU matmuls + GLU ----
    a = jnp.dot(xn, w1a_ref[...], preferred_element_type=jnp.float32) + b1a_ref[...]
    g = jnp.dot(xn, w1g_ref[...], preferred_element_type=jnp.float32) + b1g_ref[...]
    glu = a * jax.nn.sigmoid(g)                                   # (rows, C), f32

    # ---- depthwise conv along T ('SAME'): padded VMEM scratch + window loads ----
    # pad halos must be re-zeroed every step (grid may be core-sharded).
    if pad > 0:
        pad_ref[:, :pad, :] = jnp.zeros((bb, pad, C), jnp.float32)
        pad_ref[:, pad + T:, :] = jnp.zeros((bb, pad, C), jnp.float32)
    pad_ref[:, pad:pad + T, :] = glu.reshape(bb, T, C)

    dw = dw_ref[...]                                              # (K, C), hoisted
    acc = jnp.zeros((bb, T, C), jnp.float32)
    for k in range(K):                                            # static unroll
        acc = acc + pad_ref[:, k:k + T, :] * dw[k]
    acc = acc + db_ref[...]                                       # (bb, T, C)

    act_ref[...] = acc.astype(act_ref.dtype)                      # bf16 store

    # ---- per-block channel stats (reduced in the wrapper) ----
    acc2 = acc.reshape(rows, C)
    sum_ref[...] = jnp.sum(acc2, axis=0, keepdims=True).reshape(1, 1, C)
    ssq_ref[...] = jnp.sum(acc2 * acc2, axis=0, keepdims=True).reshape(1, 1, C)


# --------------------------------------------------------------------------
# stage 2: BN affine (precomputed scale/shift) -> SiLU -> 1x1(C->D)
# --------------------------------------------------------------------------
def _stage2_kernel(act_ref, scale_ref, shift_ref, w2_ref, b2_ref, o_ref):
    a = act_ref[...].astype(jnp.float32)                          # (rt, C)
    y = a * scale_ref[...] + shift_ref[...]                       # BatchNorm1d
    y = y * jax.nn.sigmoid(y)                                     # SiLU
    out = jnp.dot(y.astype(jnp.bfloat16), w2_ref[...],            # bf16 MXU, f32 acc
                  preferred_element_type=jnp.float32) + b2_ref[...]
    o_ref[...] = out.astype(o_ref.dtype)


# --------------------------------------------------------------------------
# tile-size selection (conservative, derived from the generation's VMEM budget)
# --------------------------------------------------------------------------
def _pick_batch_block(B, T, D, C, K, budget_bytes):
    # fixed operands (bf16 w1a/w1g + small biases / taps)
    weights = 2 * 2 * D * C + 4 * 6 * C + 2 * K * C
    budget = max(budget_bytes - weights, 1)
    per_b = (T * D * (4 * 2 + 2 + 4)        # x f32 double-buffer + xn bf16 + x f32
             + T * C * (2 * 2 + 4 * 5)      # act bf16 double-buffer + a/g/glu/acc
             + (T + K - 1) * C * 4)         # padded depthwise scratch
    bb = max(1, min(B, budget // max(per_b, 1)))
    while B % bb:
        bb -= 1
    return bb


def _pick_row_block(rows, C, D, budget_bytes):
    weights = 2 * C * D + 4 * (2 * C + D)
    budget = max(budget_bytes - weights, 1)
    per_row = C * (2 * 2 + 4 * 2) + D * (4 * 2 + 4 * 2)
    rb = max(1, min(rows, budget // max(per_row, 1)))
    if rows % 8 != 0:
        return rows                 # tiny / ragged: single full block
    rb = max(8, (rb // 8) * 8)
    while rows % rb:
        rb -= 8
    return rb


# --------------------------------------------------------------------------
# wrapper
# --------------------------------------------------------------------------
def conv_module_forward(x, params, *, num_channels, depthwise_kernel_size,
                        batch_block=None, row_block=None):
    if (depthwise_kernel_size - 1) % 2 != 0:
        raise ValueError("depthwise_kernel_size must be odd ('SAME' padding).")
    (ln_g, ln_b, w1, b1, dw, db, bn_g, bn_b, w2, b2) = params
    B, T, D = x.shape
    C, K = num_channels, depthwise_kernel_size
    rows = B * T

    vmem_limit = _vmem_limit_bytes()
    tile_budget = vmem_limit // 3

    # Fold the LayerNorm affine into the 1x1 weights/biases, pre-split the GLU
    # halves (lane-aligned a/g tiles) and cast weights to bf16 once.
    # NOTE: for real Conformer sizes keep C and D multiples of 128 so the
    # activations and the output store lane-dense (unmasked vst).
    ln_gcol = ln_g.reshape(D, 1).astype(jnp.float32)
    w1a = (w1[:, :C] * ln_gcol).astype(jnp.bfloat16)
    w1g = (w1[:, C:] * ln_gcol).astype(jnp.bfloat16)
    b1a = b1[:, :C] + ln_b.reshape(1, D) @ w1[:, :C]
    b1g = b1[:, C:] + ln_b.reshape(1, D) @ w1[:, C:]
    w2b = w2.astype(jnp.bfloat16)

    if batch_block is None:
        batch_block = _pick_batch_block(B, T, D, C, K, tile_budget)
    if B % batch_block:
        raise ValueError("batch_block must divide B")
    gb = B // batch_block

    full2d = lambda i: (0, 0)

    # ---------------- stage 1 ----------------
    st1_cost = pl.CostEstimate(
        flops=2 * rows * D * 2 * C + rows * (6 * D + (2 * K + 10) * C),
        transcendentals=rows * (C + 1),
        bytes_accessed=4 * rows * D + 2 * rows * C + 2 * 2 * D * C
        + 4 * (K + 6) * C,
    )
    act, ch_sum, ch_ssq = pl.pallas_call(
        _stage1_kernel,
        grid=(gb,),
        in_specs=[
            pl.BlockSpec((batch_block, T, D), lambda i: (i, 0, 0)),   # x
            pl.BlockSpec((D, C), full2d),                             # w1a (bf16, LN-folded)
            pl.BlockSpec((D, C), full2d),                             # w1g (bf16, LN-folded)
            pl.BlockSpec((1, C), full2d),                             # b1a (folded)
            pl.BlockSpec((1, C), full2d),                             # b1g (folded)
            pl.BlockSpec((K, C), full2d),                             # depthwise w
            pl.BlockSpec((1, C), full2d),                             # depthwise b
        ],
        out_specs=[
            pl.BlockSpec((batch_block, T, C), lambda i: (i, 0, 0)),   # pre-BN act (bf16)
            pl.BlockSpec((1, 1, C), lambda i: (i, 0, 0)),             # per-block channel sum
            pl.BlockSpec((1, 1, C), lambda i: (i, 0, 0)),             # per-block channel sumsq
        ],
        out_shape=(
            jax.ShapeDtypeStruct((B, T, C), jnp.bfloat16),
            jax.ShapeDtypeStruct((gb, 1, C), jnp.float32),
            jax.ShapeDtypeStruct((gb, 1, C), jnp.float32),
        ),
        scratch_shapes=[pltpu.VMEM((batch_block, T + K - 1, C), jnp.float32)],
        compiler_params=pltpu.CompilerParams(
            dimension_semantics=("parallel",),     # independent blocks (2 TCs on v7x)
            vmem_limit_bytes=vmem_limit),
        cost_estimate=st1_cost,
    )(x, w1a, w1g, b1a, b1g, dw, db)

    # ---------------- BN scale/shift from the tree-reduced partials ----------------
    inv_n = 1.0 / float(rows)
    csum = jnp.sum(ch_sum, axis=0)                       # (1, C)
    cssq = jnp.sum(ch_ssq, axis=0)                       # (1, C)
    mu = csum * inv_n
    bvar = jnp.maximum(cssq * inv_n - mu * mu, 0.0)      # biased batch variance, clamped
    scale = bn_g * jax.lax.rsqrt(bvar + BN_EPS)          # (1, C)
    shift = bn_b - mu * scale                            # (1, C)

    # ---------------- stage 2 ----------------
    if row_block is None:
        row_block = _pick_row_block(rows, C, D, tile_budget)
    if rows % row_block:
        raise ValueError("row_block must divide B*T")
    act2 = act.reshape(rows, C)

    st2_cost = pl.CostEstimate(
        flops=2 * rows * C * D + rows * (6 * C + D),
        transcendentals=rows * C,
        bytes_accessed=2 * rows * C + 4 * rows * D + 2 * C * D + 4 * (2 * C + D),
    )
    out2 = pl.pallas_call(
        _stage2_kernel,
        grid=(rows // row_block,),
        in_specs=[
            pl.BlockSpec((row_block, C), lambda i: (i, 0)),           # pre-BN act rows (bf16)
            pl.BlockSpec((1, C), full2d),                             # BN scale
            pl.BlockSpec((1, C), full2d),                             # BN shift
            pl.BlockSpec((C, D), full2d),                             # w2 (bf16)
            pl.BlockSpec((1, D), full2d),                             # b2
        ],
        out_specs=pl.BlockSpec((row_block, D), lambda i: (i, 0)),
        out_shape=jax.ShapeDtypeStruct((rows, D), jnp.float32),
        compiler_params=pltpu.CompilerParams(
            dimension_semantics=("parallel",),
            vmem_limit_bytes=vmem_limit),
        cost_estimate=st2_cost,
    )(act2, scale, shift, w2b, b2)

    return out2.reshape(B, T, D)


# --------------------------------------------------------------------------
# pure-JAX reference (matmul_dtype / act_dtype let us precision-match the
# bf16 MXU path and the bf16 inter-stage activation)
# --------------------------------------------------------------------------
def conv_module_reference(x, params, *, num_channels, depthwise_kernel_size,
                          matmul_dtype=jnp.float32, act_dtype=jnp.float32):
    (ln_g, ln_b, w1, b1, dw, db, bn_g, bn_b, w2, b2) = params
    B, T, D = x.shape
    C, K = num_channels, depthwise_kernel_size
    pad = (K - 1) // 2

    def mm(a, b):
        return jnp.dot(a.astype(matmul_dtype), b.astype(matmul_dtype),
                       preferred_element_type=jnp.float32)

    xf = x.reshape(B * T, D).astype(jnp.float32)
    mu = jnp.mean(xf, axis=-1, keepdims=True)
    var = jnp.mean((xf - mu) ** 2, axis=-1, keepdims=True)
    xn = (xf - mu) / jnp.sqrt(var + LN_EPS) * ln_g.reshape(D) + ln_b.reshape(D)

    h = mm(xn, w1) + b1.reshape(2 * C)
    glu = (h[:, :C] * jax.nn.sigmoid(h[:, C:])).reshape(B, T, C)

    xp = jnp.pad(glu, ((0, 0), (pad, pad), (0, 0)))
    acc = jnp.zeros((B, T, C), jnp.float32)
    for k in range(K):
        acc = acc + xp[:, k:k + T, :] * dw[k].reshape(1, 1, C)
    acc = acc + db.reshape(C)

    bn_mu = jnp.mean(acc, axis=(0, 1), keepdims=True)
    bn_var = jnp.mean((acc - bn_mu) ** 2, axis=(0, 1), keepdims=True)
    acc_q = acc.astype(act_dtype).astype(jnp.float32)        # inter-stage quantization
    y = (acc_q - bn_mu) / jnp.sqrt(bn_var + BN_EPS) * bn_g.reshape(C) + bn_b.reshape(C)
    y = y * jax.nn.sigmoid(y)

    out = mm(y.reshape(B * T, C), w2) + b2.reshape(D)
    return out.reshape(B, T, D)


def make_params(key, input_dim, num_channels, depthwise_kernel_size):
    D, C, K = input_dim, num_channels, depthwise_kernel_size
    ks = jax.random.split(key, 10)
    f32 = jnp.float32
    ln_g = (1.0 + 0.1 * jax.random.normal(ks[0], (1, D))).astype(f32)
    ln_b = (0.1 * jax.random.normal(ks[1], (1, D))).astype(f32)
    w1 = (jax.random.normal(ks[2], (D, 2 * C)) / jnp.sqrt(D)).astype(f32)
    b1 = (0.05 * jax.random.normal(ks[3], (1, 2 * C))).astype(f32)
    dw = (0.3 * jax.random.normal(ks[4], (K, C))).astype(f32)   # dw[k, c] == torch weight[c, 0, k]
    db = (0.05 * jax.random.normal(ks[5], (1, C))).astype(f32)
    bn_g = (1.0 + 0.1 * jax.random.normal(ks[6], (1, C))).astype(f32)
    bn_b = (0.05 * jax.random.normal(ks[7], (1, C))).astype(f32)
    w2 = (jax.random.normal(ks[8], (C, D)) / jnp.sqrt(C)).astype(f32)
    b2 = (0.05 * jax.random.normal(ks[9], (1, D))).astype(f32)
    return (ln_g, ln_b, w1, b1, dw, db, bn_g, bn_b, w2, b2)


if __name__ == "__main__":
    B, T = 2, 16                 # batch, sequence length
    input_dim = 32               # D
    num_channels = 4             # C
    depthwise_kernel_size = 3    # K (odd, 'SAME' padding)

    root = jax.random.PRNGKey(0)
    kx, kp = jax.random.split(root)
    x = jax.random.normal(kx, (B, T, input_dim), dtype=jnp.float32)
    params = make_params(kp, input_dim, num_channels, depthwise_kernel_size)

    # small explicit tiles so the toy shapes still exercise real grids:
    # stage-1 grid = (2,) over batch blocks, stage-2 grid = (4,) over B*T rows.
    out = conv_module_forward(x, params, num_channels=num_channels,
                              depthwise_kernel_size=depthwise_kernel_size,
                              batch_block=1, row_block=8)
    out = jax.block_until_ready(out)
    assert out.shape == (B, T, input_dim)

    # implementation check vs precision-matched reference (bf16 MXU inputs,
    # bf16 inter-stage activation).
    ref_bf16 = conv_module_reference(x, params, num_channels=num_channels,
                                     depthwise_kernel_size=depthwise_kernel_size,
                                     matmul_dtype=jnp.bfloat16,
                                     act_dtype=jnp.bfloat16)
    err_bf16 = float(jnp.max(jnp.abs(out - ref_bf16)))
    assert jnp.allclose(out, ref_bf16, atol=2e-2, rtol=2e-2), err_bf16

    # fidelity check vs full-f32 reference (looser: bf16 at the MXU boundary
    # and bf16 inter-stage activation).
    ref_f32 = conv_module_reference(x, params, num_channels=num_channels,
                                    depthwise_kernel_size=depthwise_kernel_size)
    err_f32 = float(jnp.max(jnp.abs(out - ref_f32)))
    assert jnp.allclose(out, ref_f32, atol=6e-2, rtol=6e-2), err_f32

    print("KERNEL_OK")
</pallas_src>

<mosaic_0001>
module attributes {stable_mosaic.version = 11 : i64} {
  func.func @_stage1_kernel(%arg0: i32, %arg1: memref<1x16x32xf32, #tpu.memory_space<vmem>>, %arg2: memref<32x4xbf16, #tpu.memory_space<vmem>>, %arg3: memref<32x4xbf16, #tpu.memory_space<vmem>>, %arg4: memref<1x4xf32, #tpu.memory_space<vmem>>, %arg5: memref<1x4xf32, #tpu.memory_space<vmem>>, %arg6: memref<3x4xf32, #tpu.memory_space<vmem>>, %arg7: memref<1x4xf32, #tpu.memory_space<vmem>>, %arg8: memref<1x16x4xbf16, #tpu.memory_space<vmem>>, %arg9: memref<1x1x4xf32, #tpu.memory_space<vmem>>, %arg10: memref<1x1x4xf32, #tpu.memory_space<vmem>>, %arg11: memref<1x18x4xf32, #tpu.memory_space<vmem>>) attributes {dimension_semantics = [#tpu.dimension_semantics<parallel>], iteration_bounds = array<i64: 2>, scalar_prefetch = 0 : i64, scratch_operands = 1 : i64, tpu.core_type = #tpu.core_type<tc>, window_params = [{transform_indices = @transform_0, window_bounds = array<i64: 1, 16, 32>}, {pipeline_mode = #tpu.pipeline_mode<synchronous>, transform_indices = @transform_1, window_bounds = array<i64: 32, 4>}, {pipeline_mode = #tpu.pipeline_mode<synchronous>, transform_indices = @transform_2, window_bounds = array<i64: 32, 4>}, {pipeline_mode = #tpu.pipeline_mode<synchronous>, transform_indices = @transform_3, window_bounds = array<i64: 1, 4>}, {pipeline_mode = #tpu.pipeline_mode<synchronous>, transform_indices = @transform_4, window_bounds = array<i64: 1, 4>}, {pipeline_mode = #tpu.pipeline_mode<synchronous>, transform_indices = @transform_5, window_bounds = array<i64: 3, 4>}, {pipeline_mode = #tpu.pipeline_mode<synchronous>, transform_indices = @transform_6, window_bounds = array<i64: 1, 4>}, {transform_indices = @transform_7, window_bounds = array<i64: 1, 16, 4>}, {transform_indices = @transform_8, window_bounds = array<i64: 1, 1, 4>}, {transform_indices = @transform_9, window_bounds = array<i64: 1, 1, 4>}]} {
    %c0 = arith.constant 0 : index
    %c0_0 = arith.constant 0 : index
    %c0_1 = arith.constant 0 : index
    %0 = vector.load %arg1[%c0, %c0_0, %c0_1] : memref<1x16x32xf32, #tpu.memory_space<vmem>>, vector<1x16x32xf32>
    %1 = vector.shape_cast %0 : vector<1x16x32xf32> to vector<16x32xf32>
    %cst = arith.constant dense<0.000000e+00> : vector<16xf32>
    %2 = vector.multi_reduction <add>, %1, %cst [1] : vector<16x32xf32> to vector<16xf32>
    %3 = vector.shape_cast %2 : vector<16xf32> to vector<16x1xf32>
    %cst_2 = arith.constant 3.200000e+01 : f32
    %4 = vector.broadcast %cst_2 : f32 to vector<16x1xf32>
    %5 = arith.divf %3, %4 : vector<16x1xf32>
    %6 = vector.broadcast %5 : vector<16x1xf32> to vector<16x32xf32>
    %7 = arith.subf %1, %6 : vector<16x32xf32>
    %8 = arith.mulf %7, %7 : vector<16x32xf32>
    %cst_3 = arith.constant dense<0.000000e+00> : vector<16xf32>
    %9 = vector.multi_reduction <add>, %8, %cst_3 [1] : vector<16x32xf32> to vector<16xf32>
    %10 = vector.shape_cast %9 : vector<16xf32> to vector<16x1xf32>
    %cst_4 = arith.constant 3.200000e+01 : f32
    %11 = vector.broadcast %cst_4 : f32 to vector<16x1xf32>
    %12 = arith.divf %10, %11 : vector<16x1xf32>
    %cst_5 = arith.constant 9.99999974E-6 : f32
    %13 = vector.broadcast %cst_5 : f32 to vector<16x1xf32>
    %14 = arith.addf %12, %13 : vector<16x1xf32>
    %15 = math.rsqrt %14 : vector<16x1xf32>
    %16 = vector.broadcast %15 : vector<16x1xf32> to vector<16x32xf32>
    %17 = arith.mulf %7, %16 : vector<16x32xf32>
    %18 = arith.truncf %17 : vector<16x32xf32> to vector<16x32xbf16>
    %c0_6 = arith.constant 0 : index
    %c0_7 = arith.constant 0 : index
    %19 = vector.load %arg2[%c0_6, %c0_7] : memref<32x4xbf16, #tpu.memory_space<vmem>>, vector<32x4xbf16>
    %cst_8 = arith.constant dense<0.000000e+00> : vector<16x4xf32>
    %20 = tpu.matmul %18, %19, %cst_8 {dimension_numbers = #tpu.dot_dimension_numbers<[1], [0], [0], [1], [0, 0, 1, 1], [], []>} : vector<16x32xbf16>, vector<32x4xbf16>, vector<16x4xf32> -> vector<16x4xf32>
    %c0_9 = arith.constant 0 : index
    %c0_10 = arith.constant 0 : index
    %21 = vector.load %arg4[%c0_9, %c0_10] : memref<1x4xf32, #tpu.memory_space<vmem>>, vector<1x4xf32>
    %22 = vector.broadcast %21 : vector<1x4xf32> to vector<16x4xf32>
    %23 = arith.addf %20, %22 : vector<16x4xf32>
    %c0_11 = arith.constant 0 : index
    %c0_12 = arith.constant 0 : index
    %24 = vector.load %arg3[%c0_11, %c0_12] : memref<32x4xbf16, #tpu.memory_space<vmem>>, vector<32x4xbf16>
    %cst_13 = arith.constant dense<0.000000e+00> : vector<16x4xf32>
    %25 = tpu.matmul %18, %24, %cst_13 {dimension_numbers = #tpu.dot_dimension_numbers<[1], [0], [0], [1], [0, 0, 1, 1], [], []>} : vector<16x32xbf16>, vector<32x4xbf16>, vector<16x4xf32> -> vector<16x4xf32>
    %c0_14 = arith.constant 0 : index
    %c0_15 = arith.constant 0 : index
    %26 = vector.load %arg5[%c0_14, %c0_15] : memref<1x4xf32, #tpu.memory_space<vmem>>, vector<1x4xf32>
    %27 = vector.broadcast %26 : vector<1x4xf32> to vector<16x4xf32>
    %28 = arith.addf %25, %27 : vector<16x4xf32>
    %29 = arith.negf %28 : vector<16x4xf32>
    %30 = math.exp %29 : vector<16x4xf32>
    %cst_16 = arith.constant 1.000000e+00 : f32
    %31 = vector.broadcast %cst_16 : f32 to vector<16x4xf32>
    %32 = arith.addf %31, %30 : vector<16x4xf32>
    %33 = arith.divf %31, %32 : vector<16x4xf32>
    %34 = arith.mulf %23, %33 : vector<16x4xf32>
    %cst_17 = arith.constant 0.000000e+00 : f32
    %35 = vector.broadcast %cst_17 : f32 to vector<1x1x4xf32>
    %c0_18 = arith.constant 0 : index
    %c0_19 = arith.constant 0 : index
    %c0_20 = arith.constant 0 : index
    %36 = vector.load %arg11[%c0_18, %c0_19, %c0_20] : memref<1x18x4xf32, #tpu.memory_space<vmem>>, vector<1x1x4xf32>
    tpu.vector_store %arg11[%c0_18, %c0_19, %c0_20], %35 {strides = array<i32>} : memref<1x18x4xf32, #tpu.memory_space<vmem>>, vector<1x1x4xf32>,
    %cst_21 = arith.constant 0.000000e+00 : f32
    %37 = vector.broadcast %cst_21 : f32 to vector<1x1x4xf32>
    %c0_22 = arith.constant 0 : index
    %c17 = arith.constant 17 : index
    %c0_23 = arith.constant 0 : index
    %38 = vector.load %arg11[%c0_22, %c17, %c0_23] : memref<1x18x4xf32, #tpu.memory_space<vmem>>, vector<1x1x4xf32>
    tpu.vector_store %arg11[%c0_22, %c17, %c0_23], %37 {strides = array<i32>} : memref<1x18x4xf32, #tpu.memory_space<vmem>>, vector<1x1x4xf32>,
    %39 = vector.shape_cast %34 : vector<16x4xf32> to vector<1x16x4xf32>
    %c0_24 = arith.constant 0 : index
    %c1 = arith.constant 1 : index
    %c0_25 = arith.constant 0 : index
    %40 = vector.load %arg11[%c0_24, %c1, %c0_25] : memref<1x18x4xf32, #tpu.memory_space<vmem>>, vector<1x16x4xf32>
    tpu.vector_store %arg11[%c0_24, %c1, %c0_25], %39 {strides = array<i32>} : memref<1x18x4xf32, #tpu.memory_space<vmem>>, vector<1x16x4xf32>,
    %c0_26 = arith.constant 0 : index
    %c0_27 = arith.constant 0 : index
    %41 = vector.load %arg6[%c0_26, %c0_27] : memref<3x4xf32, #tpu.memory_space<vmem>>, vector<3x4xf32>
    %cst_28 = arith.constant 0.000000e+00 : f32
    %42 = vector.broadcast %cst_28 : f32 to vector<1x16x4xf32>
    %c0_29 = arith.constant 0 : index
    %c0_30 = arith.constant 0 : index
    %c0_31 = arith.constant 0 : index
    %43 = vector.load %arg11[%c0_29, %c0_30, %c0_31] : memref<1x18x4xf32, #tpu.memory_space<vmem>>, vector<1x16x4xf32>
    %44 = vector.extract_strided_slice %41 {offsets = [0, 0], sizes = [1, 4], strides = [1, 1]} : vector<3x4xf32> to vector<1x4xf32>
    %45 = vector.shape_cast %44 : vector<1x4xf32> to vector<4xf32>
    %46 = vector.shape_cast %45 : vector<4xf32> to vector<1x1x4xf32>
    %47 = vector.broadcast %46 : vector<1x1x4xf32> to vector<1x16x4xf32>
    %48 = arith.mulf %43, %47 : vector<1x16x4xf32>
    %49 = arith.addf %42, %48 : vector<1x16x4xf32>
    %c0_32 = arith.constant 0 : index
    %c1_33 = arith.constant 1 : index
    %c0_34 = arith.constant 0 : index
    %50 = vector.load %arg11[%c0_32, %c1_33, %c0_34] : memref<1x18x4xf32, #tpu.memory_space<vmem>>, vector<1x16x4xf32>
    %51 = vector.extract_strided_slice %41 {offsets = [1, 0], sizes = [1, 4], strides = [1, 1]} : vector<3x4xf32> to vector<1x4xf32>
    %52 = vector.shape_cast %51 : vector<1x4xf32> to vector<4xf32>
    %53 = vector.shape_cast %52 : vector<4xf32> to vector<1x1x4xf32>
    %54 = vector.broadcast %53 : vector<1x1x4xf32> to vector<1x16x4xf32>
    %55 = arith.mulf %50, %54 : vector<1x16x4xf32>
    %56 = arith.addf %49, %55 : vector<1x16x4xf32>
    %c0_35 = arith.constant 0 : index
    %c2 = arith.constant 2 : index
    %c0_36 = arith.constant 0 : index
    %57 = vector.load %arg11[%c0_35, %c2, %c0_36] : memref<1x18x4xf32, #tpu.memory_space<vmem>>, vector<1x16x4xf32>
    %58 = vector.extract_strided_slice %41 {offsets = [2, 0], sizes = [1, 4], strides = [1, 1]} : vector<3x4xf32> to vector<1x4xf32>
    %59 = vector.shape_cast %58 : vector<1x4xf32> to vector<4xf32>
    %60 = vector.shape_cast %59 : vector<4xf32> to vector<1x1x4xf32>
    %61 = vector.broadcast %60 : vector<1x1x4xf32> to vector<1x16x4xf32>
    %62 = arith.mulf %57, %61 : vector<1x16x4xf32>
    %63 = arith.addf %56, %62 : vector<1x16x4xf32>
    %c0_37 = arith.constant 0 : index
    %c0_38 = arith.constant 0 : index
    %64 = vector.load %arg7[%c0_37, %c0_38] : memref<1x4xf32, #tpu.memory_space<vmem>>, vector<1x4xf32>
    %65 = vector.shape_cast %64 : vector<1x4xf32> to vector<1x1x4xf32>
    %66 = vector.broadcast %65 : vector<1x1x4xf32> to vector<1x16x4xf32>
    %67 = arith.addf %63, %66 : vector<1x16x4xf32>
    %68 = arith.truncf %67 : vector<1x16x4xf32> to vector<1x16x4xbf16>
    %c0_39 = arith.constant 0 : index
    %c0_40 = arith.constant 0 : index
    %c0_41 = arith.constant 0 : index
    %69 = vector.load %arg8[%c0_39, %c0_40, %c0_41] : memref<1x16x4xbf16, #tpu.memory_space<vmem>>, vector<1x16x4xbf16>
    tpu.vector_store %arg8[%c0_39, %c0_40, %c0_41], %68 {strides = array<i32>} : memref<1x16x4xbf16, #tpu.memory_space<vmem>>, vector<1x16x4xbf16>,
    %70 = vector.shape_cast %67 : vector<1x16x4xf32> to vector<16x4xf32>
    %cst_42 = arith.constant dense<0.000000e+00> : vector<4xf32>
    %71 = vector.multi_reduction <add>, %70, %cst_42 [0] : vector<16x4xf32> to vector<4xf32>
    %72 = vector.shape_cast %71 : vector<4xf32> to vector<1x4xf32>
    %73 = vector.shape_cast %72 : vector<1x4xf32> to vector<1x1x4xf32>
    %c0_43 = arith.constant 0 : index
    %c0_44 = arith.constant 0 : index
    %c0_45 = arith.constant 0 : index
    %74 = vector.load %arg9[%c0_43, %c0_44, %c0_45] : memref<1x1x4xf32, #tpu.memory_space<vmem>>, vector<1x1x4xf32>
    tpu.vector_store %arg9[%c0_43, %c0_44, %c0_45], %73 {strides = array<i32>} : memref<1x1x4xf32, #tpu.memory_space<vmem>>, vector<1x1x4xf32>,
    %75 = arith.mulf %70, %70 : vector<16x4xf32>
    %cst_46 = arith.constant dense<0.000000e+00> : vector<4xf32>
    %76 = vector.multi_reduction <add>, %75, %cst_46 [0] : vector<16x4xf32> to vector<4xf32>
    %77 = vector.shape_cast %76 : vector<4xf32> to vector<1x4xf32>
    %78 = vector.shape_cast %77 : vector<1x4xf32> to vector<1x1x4xf32>
    %c0_47 = arith.constant 0 : index
    %c0_48 = arith.constant 0 : index
    %c0_49 = arith.constant 0 : index
    %79 = vector.load %arg10[%c0_47, %c0_48, %c0_49] : memref<1x1x4xf32, #tpu.memory_space<vmem>>, vector<1x1x4xf32>
    tpu.vector_store %arg10[%c0_47, %c0_48, %c0_49], %78 {strides = array<i32>} : memref<1x1x4xf32, #tpu.memory_space<vmem>>, vector<1x1x4xf32>,
    return
  }
  func.func @transform_0(%arg0: i32) -> (i32, i32, i32) {
    %c0_i32 = arith.constant 0 : i32
    %c0_i32_0 = arith.constant 0 : i32
    %c0_i32_1 = arith.constant 0 : i32
    return %arg0, %c0_i32, %c0_i32_0 : i32, i32, i32
  }
  func.func @transform_1(%arg0: i32) -> (i32, i32) {
    %c0_i32 = arith.constant 0 : i32
    %c0_i32_0 = arith.constant 0 : i32
    %c0_i32_1 = arith.constant 0 : i32
    return %c0_i32, %c0_i32_0 : i32, i32
  }
  func.func @transform_2(%arg0: i32) -> (i32, i32) {
    %c0_i32 = arith.constant 0 : i32
    %c0_i32_0 = arith.constant 0 : i32
    %c0_i32_1 = arith.constant 0 : i32
    return %c0_i32, %c0_i32_0 : i32, i32
  }
  func.func @transform_3(%arg0: i32) -> (i32, i32) {
    %c0_i32 = arith.constant 0 : i32
    %c0_i32_0 = arith.constant 0 : i32
    %c0_i32_1 = arith.constant 0 : i32
    return %c0_i32, %c0_i32_0 : i32, i32
  }
  func.func @transform_4(%arg0: i32) -> (i32, i32) {
    %c0_i32 = arith.constant 0 : i32
    %c0_i32_0 = arith.constant 0 : i32
    %c0_i32_1 = arith.constant 0 : i32
    return %c0_i32, %c0_i32_0 : i32, i32
  }
  func.func @transform_5(%arg0: i32) -> (i32, i32) {
    %c0_i32 = arith.constant 0 : i32
    %c0_i32_0 = arith.constant 0 : i32
    %c0_i32_1 = arith.constant 0 : i32
    return %c0_i32, %c0_i32_0 : i32, i32
  }
  func.func @transform_6(%arg0: i32) -> (i32, i32) {
    %c0_i32 = arith.constant 0 : i32
    %c0_i32_0 = arith.constant 0 : i32
    %c0_i32_1 = arith.constant 0 : i32
    return %c0_i32, %c0_i32_0 : i32, i32
  }
  func.func @transform_7(%arg0: i32) -> (i32, i32, i32) {
    %c0_i32 = arith.constant 0 : i32
    %c0_i32_0 = arith.constant 0 : i32
    %c0_i32_1 = arith.constant 0 : i32
    return %arg0, %c0_i32, %c0_i32_0 : i32, i32, i32
  }
  func.func @transform_8(%arg0: i32) -> (i32, i32, i32) {
    %c0_i32 = arith.constant 0 : i32
    %c0_i32_0 = arith.constant 0 : i32
    %c0_i32_1 = arith.constant 0 : i32
    return %arg0, %c0_i32, %c0_i32_0 : i32, i32, i32
  }
  func.func @transform_9(%arg0: i32) -> (i32, i32, i32) {
    %c0_i32 = arith.constant 0 : i32
    %c0_i32_0 = arith.constant 0 : i32
    %c0_i32_1 = arith.constant 0 : i32
    return %arg0, %c0_i32, %c0_i32_0 : i32, i32, i32
  }
}

</mosaic_0001>

<bundles_post_ra>
// kernel: tpu_custom_call.1
= control target key start
LH: loop header
LB: loop body
LE: loop exit
PB: predicated region body
PF: predicated region fallthrough
CT: control target
= control target key end

     0   :  { %s1143_s0 = inlined_call_operand.vmem [shape: f32[2,16,32], index: 0, kind: input, shape index: {}]   ;;  %s1144_s1 = inlined_call_operand.vmem [shape: bf16[32,4], index: 1, kind: input, shape index: {}]   ;;  %s1145_s2 = inlined_call_operand.vmem [shape: bf16[32,4], index: 2, kind: input, shape index: {}]   ;;  %s1146_s3 = inlined_call_operand.vmem [shape: f32[1,4], index: 3, kind: input, shape index: {}]   ;;  %s1147_s4 = inlined_call_operand.vmem [shape: f32[1,4], index: 4, kind: input, shape index: {}]   ;;  %s1148_s5 = inlined_call_operand.vmem [shape: f32[3,4], index: 5, kind: input, shape index: {}]   ;;  %s1149_s6 = inlined_call_operand.vmem [shape: f32[1,4], index: 6, kind: input, shape index: {}]   ;;  %s1150_s7 = inlined_call_operand.vmem [shape: bf16[2,16,4], index: 7, kind: output, shape index: {0}]   ;;  %s1151_s8 = inlined_call_operand.hbm [shape: f32[2,1,4], index: 8, kind: output, shape index: {1}]   ;;  %s1152_s9 = inlined_call_operand.hbm [shape: f32[2,1,4], index: 9, kind: output, shape index: {2}]  }
   0x1   :  { %1153 = sst [smem:[#allocation9_spill]] %s1143_s0 }
   0x2   :  { %1154 = sst [smem:[#allocation10_spill]] %s1144_s1 }
   0x3   :  { %15 = vsyncpa [#allocation4], 0 }
   0x4   :  { %17 = vsyncpa [#allocation4 + $0x1], 0 }
   0x5   :  { %18 = vsyncpa [#allocation6], 0 }
   0x6   :  { %20 = vsyncpa [#allocation6 + $0x1], 0  ;;  %s973_s30 = smov 0   ;;  %s975_s10 = smov 0  }
   0x7   :  { %s977_s11 = smov 0   ;;  %s979_s12 = smov 0  }
   0x8 LB: > { %s994_s13 = sadd.s32 4294967295, %s919_s12   ;;  %s726_s14 = sadd.s32 4294967294, %s919_s12   ;;  %s919_s12 = sphi %s979_s12, %s1162_s12   ;;  %s915_s11 = sphi %s977_s11, %s1161_s11   ;;  %s911_s10 = sphi %s975_s10, %s1160_s10   ;;  %s907_s30 = sphi %s973_s30, %s1159_s30  }
   0x9   : > { %s998_s15 = sadd.s32 1, %s919_s12   ;;  %s211_s16 = sadd.s32 1, %s915_s11 }
   0xa   : > { %s208_s17 = ssub.s32 %s919_s12, %s998_s15  ;;  %p221_p0 = scmp.ne.s32.totalorder %s915_s11, %s911_s10 }
   0xb   : > { %p209_p1 = scmp.eq.s32.totalorder %s208_s17, 0  ;;  %p222_p2 = scmp.eq.s32.totalorder %s994_s13, 1 }
   0xc   : > { %p227_p3 = scmp.ne.s32.totalorder %s911_s10, %s907_s30  ;;  %p228_p4 = scmp.eq.s32.totalorder %s726_s14, 1 }
   0xd   : > { %s1009_s18 = scalar_select %p209_p1, %s915_s11, %s211_s16  }
   0xe   : > { %p1011_p5 = por %p222_p2, %p221_p0  ;;  %p1015_p6 = por %p228_p4, %p227_p3 }
   0xf   : > { %p729_p7 = scmp.ge.s32.totalorder %s919_s12, 1  ;;  %p298_p8 = scmp.lt.s32.totalorder %s919_s12, 3 }
  0x11   : > { %p299_p9 = pnand %p729_p7, %p298_p8 }
  0x12   : > { %p342_p10 = scmp.lt.s32.totalorder (!%p299_p9), %s994_s13, 1  ;;  %s1157_s0 = sld [smem:[#allocation9_spill]] (!%p299_p9) }
  0x13   : > { %302 = sbr.rel (%p299_p9) target bundleno = 516 (0x204), region = 48  ;;  %s1158_s1 = sld [smem:[#allocation10_spill]] (!%p299_p9) }
  0x14   : > { %s601_s26 = scalar_lea.hbm (!%p299_p9), %s1151_s8, %s994_s13  ;;  %s614_s29 = scalar_lea.hbm (!%p299_p9), %s1152_s9, %s994_s13 }
  0x15   : > { %s1085_s17 = sshll.u32 (!%p299_p9), %s601_s26, 4  ;;  %s1090_s24 = sshll.u32 (!%p299_p9), %s614_s29, 4  ;;  %s606_s17 = int_to_ptr.hbm [resolvable:$true] %s1085_s17  ;;  %s619_s24 = int_to_ptr.hbm [resolvable:$true] %s1090_s24 }
  0x16   : > { %s845_s29 = scalar_lea.hbm (!%p299_p9), %s1151_s8, 2 }
  0x18   : > { %s1023_s21 = scalar_select %p342_p10, %s994_s13, 1  ;;  %vm355_vm0 = vcmask 261120   ;;  %v921_v4 = vmov 32.0   ;;  %v761_v22 = vld [vmem:[%s1145_s2 + $0x8] sm:$0xff]  ;;  %v760_v24 = vld [vmem:[%s1145_s2] sm:$0xff]  ;;  %vm519_vm8 = vcmask 24576  }
  0x19   : > { %811 = vrcp.f32 %v921_v4  ;;  %v759_v21 = vld [vmem:[%s1158_s1 + $0x8] sm:$0xff]  ;;  %471 = vmatpush.bf16.msra.mxu1 %v761_v22  ;;  %v758_v23 = vld [vmem:[%s1158_s1] sm:$0xff]  ;;  %v922_v51 = vmov 0.0   ;;  %vm522_vm13 = vcmask 31744  }
  0x1a   : > { %s756_s22 = sshll.u32 %s1023_s21, 4  ;;  %437 = vmatpush.bf16.msra.mxu0 %v759_v21  ;;  %v809_v48 = vld [vmem:[%s1147_s4] ss:$0 sm:$0xff]  ;;  %520 = vst.msk [vmem:[#allocation2] sm:$0x1] %vm519_vm8, %v922_v51  ;;  %s757_s16 = sshll.u32 %s1023_s21, 3 }
  0x1b   : > { %s346_s25 = scalar_lea.vmem %s1157_s0, %s756_s22  ;;  %521 = vst.msk [vmem:[#allocation2 + $0x11] sm:$0x1] %vm519_vm8, %v922_v51  ;;  %v525_v22 = vld [vmem:[%s1148_s5] sm:$0x7]  ;;  %s351_s23 = scalar_lea.vmem %s1150_s7, %s757_s16 }
  0x1c   : > { %v353_v0 = vld [vmem:[%s346_s25] sm:$0xff]  ;;  %v354_v2 = vld [vmem:[%s346_s25 + $0x8] sm:$0xff]  ;;  %s1072_s21 = sand.u32 1, %s911_s10   ;;  %s839_s25 = sshra.s32 %s606_s17, 4  ;;  %s840_s25 = int_to_ptr.hbm [resolvable:$true] %s839_s25 }
  0x1d   : > { %v356_v1 = vsel %vm355_vm0, %v353_v0, 0.0  ;;  %v359_v3 = vsel %vm355_vm0, %v354_v2, 0.0  ;;  %472 = vmatpush.bf16.msra.mxu1 %v760_v24  ;;  %v528_v24 = vperm.slane %v525_v22, 0  ;;  %s335_s14 = scalar_lea.vmem [#allocation3], %s1072_s21  ;;  %s341_s22 = scalar_lea.vmem [#allocation5], %s1072_s21 }
  0x1e   : > { %357 = vadd.xlane.f32.xlu0 %v356_v1  ;;  %438 = vmatpush.bf16.msra.mxu0 %v758_v23  ;;  %v808_v1 = vld [vmem:[%s1146_s3] ss:$0 sm:$0xff]  ;;  %s1083_s16 = sshll.u32 %s335_s14, 4  ;;  %s586_s13 = scalar_lea.sflag [#allocation4], %s1072_s21  ;;  %s604_s16 = int_to_ptr.vmem [resolvable:$true] %s1083_s16 }
  0x1f   : > { %v812_v5 = vpop.eup %811  ;;  %s841_s26 = scalar_lea.hbm %s840_s25, 1  ;;  %p846_p0 = scmp.lt.s32.totalorder %s840_s25, %s1151_s8 }
  0x20   : > { %v363_v6 = vmul.f32 32.0, %v812_v5  ;;  %vm367_vm1 = vweird.f32 %v812_v5  ;;  %p842_p11 = scmp.ne.s32.totalorder %s840_s25, %s841_s26  ;;  %p847_p1 = scmp.lt.s32.totalorder %s845_s29, %s841_s26 }
  0x22   : > { %v364_v7 = vsub.f32 1.0, %v363_v6  ;;  %p843_p12 = pnand %p842_p11, %p1011_p5  ;;  %p848_p2 = por %p847_p1, %p846_p0 }
  0x24   : > { %v365_v8 = vmul.f32 %v812_v5, %v364_v7  ;;  %p844_p13 = pneg %p843_p12 }
  0x26   : > { %360 = vadd.xlane.f32.xlu0 %v359_v3  ;;  %v366_v9 = vadd.f32 %v812_v5, %v365_v8  ;;  %p849_p3 = pnand %p848_p2, %p844_p13 }
  0x28   : > { %v368_v10 = vsel %vm367_vm1, %v812_v5, %v366_v9 }
  0x91   : > { %v358_v11 = vpop.xlane.xlu0 %357 }
  0x92   : > { %v369_v12 = vmul.f32 %v368_v10, %v358_v11 }
  0x94   : > { %v371_v13 = vsub.f32 %v353_v0, %v369_v12 }
  0x96   : > { %v373_v14 = vmul.f32 %v371_v13, %v371_v13 }
  0x98   : > { %v375_v15 = vsel %vm355_vm0, %v373_v14, 0.0 }
  0x99   : > { %376 = vadd.xlane.f32.xlu1 %v375_v15  ;;  %v361_v16 = vpop.xlane.xlu0 %360 }
  0x9a   : > { %v370_v17 = vmul.f32 %v368_v10, %v361_v16 }
  0x9c   : > { %v372_v18 = vsub.f32 %v354_v2, %v370_v17 }
  0x9e   : > { %v374_v19 = vmul.f32 %v372_v18, %v372_v18 }
  0xa0   : > { %v378_v20 = vsel %vm355_vm0, %v374_v19, 0.0 }
  0xa1   : > { %379 = vadd.xlane.f32.xlu1 %v378_v20 }
 0x10c   : > { %v377_v25 = vpop.xlane.xlu1 %376 }
 0x10d   : > { %v381_v26 = vmul.f32 %v377_v25, %v368_v10  ;;  %v535_v25 = vperm.slane %v525_v22, 1 }
 0x10f   : > { %v383_v27 = vadd.f32 1e-05, %v381_v26 }
 0x111   : > { %813 = vrsqrt.f32 %v383_v27  ;;  %vm391_vm3 = vweird.f32 %v383_v27 }
 0x114   : > { %v380_v28 = vpop.xlane.xlu1 %379 }
 0x115   : > { %v382_v29 = vmul.f32 %v380_v28, %v368_v10 }
 0x117   : > { %v814_v30 = vpop.eup %813  ;;  %v384_v31 = vadd.f32 1e-05, %v382_v29 }
 0x118   : > { %v386_v32 = vmul.f32 %v814_v30, %v383_v27  ;;  %vm392_vm2 = vweird.f32 %v814_v30 }
 0x119   : > { %815 = vrsqrt.f32 %v384_v31  ;;  %vm393_vm5 = vmor %vm391_vm3, %vm392_vm2  ;;  %vm401_vm6 = vweird.f32 %v384_v31  ;;  %vm555_vm2 = vcmask 27648  }
 0x11a   : > { %v387_v33 = vmul.f32 %v814_v30, %v386_v32 }
 0x11c   : > { %v388_v34 = vmul.f32 0.5, %v387_v33 }
 0x11e   : > { %v389_v36 = vsub.f32 1.5, %v388_v34 }
 0x11f   : > { %v816_v35 = vpop.eup %815 }
 0x120   : > { %v396_v37 = vmul.f32 %v816_v35, %v384_v31  ;;  %v390_v39 = vmul.f32 %v814_v30, %v389_v36  ;;  %vm402_vm4 = vweird.f32 %v816_v35 }
 0x121   : > { %vm403_vm7 = vmor %vm401_vm6, %vm402_vm4 }
 0x122   : > { %v397_v38 = vmul.f32 %v816_v35, %v396_v37  ;;  %v394_v43 = vsel %vm393_vm5, %v814_v30, %v390_v39  ;;  %v542_v30 = vperm.slane %v525_v22, 2  ;;  %v810_v39 = vld [vmem:[%s1149_s6] ss:$0 sm:$0xff] }
 0x123   : > { %v405_v45 = vmul.f32 %v394_v43, %v371_v13 }
 0x124   : > { %v398_v40 = vmul.f32 0.5, %v397_v38 }
 0x126   : > { %v399_v41 = vsub.f32 1.5, %v398_v40 }
 0x128   : > { %v400_v42 = vmul.f32 %v816_v35, %v399_v41 }
 0x12a   : > { %v404_v44 = vsel %vm403_vm7, %v816_v35, %v400_v42 }
 0x12b   : > { %v406_v46 = vmul.f32 %v404_v44, %v372_v18 }
 0x12d   : > { %v407_v47 = vpack.c.bf16 %v406_v46, %v405_v45 }
 0x12f   : > { %742 = vmatmul.msk.bf16.vlgmr.msra.gmra.mxu0 %vm355_vm0, %v407_v47  ;;  %751 = vmatmul.msk.bf16.vlgmr.msra.gmra.mxu1 %vm355_vm0, %v407_v47 }
 0x1ac   : > { %v474_v49 = vpop.f32.mrf.mxu1  ;;  %v440_v63 = vpop.f32.mrf.mxu0 }
 0x1ad   : > { %v475_v50 = vadd.f32 %v809_v48, %v474_v49  ;;  %v441_v7 = vadd.f32 %v808_v1, %v440_v63 }
 0x1af   : > { %v752_v52 = vmul.f32 -1.442695, %v475_v50 }
 0x1b1   : > { %817 = vpow2.f32 %v752_v52 }
 0x1b4   : > { %v476_v53 = vpop.f32.mrf.mxu1  ;;  %v442_v16 = vpop.f32.mrf.mxu0 }
 0x1b5   : > { %v477_v54 = vadd.f32 %v809_v48, %v476_v53  ;;  %v443_v19 = vadd.f32 %v808_v1, %v442_v16 }
 0x1b7   : > { %v818_v55 = vpop.eup %817  ;;  %v753_v56 = vmul.f32 -1.442695, %v477_v54 }
 0x1b8   : > { %v485_v57 = vadd.f32 1.0, %v818_v55 }
 0x1b9   : > { %819 = vpow2.f32 %v753_v56 }
 0x1ba   : > { %821 = vrcp.f32 %v485_v57  ;;  %v498_v0 = vand.u32 2147483648, %v485_v57  ;;  %v496_v3 = vand.u32 2147483647, %v485_v57  ;;  %vm492_vm10 = vweird.f32 %v485_v57 }
 0x1bc   : > { %v499_v6 = vor.u32 1.1754944e-38, %v498_v0  ;;  %vm497_vm12 = vcmp.eq.f32.partialorder %v496_v3, 8.507059e+37 }
 0x1bf   : > { %v820_v58 = vpop.eup %819 }
 0x1c0   : > { %v822_v59 = vpop.eup %821  ;;  %v486_v60 = vadd.f32 1.0, %v820_v58 }
 0x1c1   : > { %v488_v61 = vmul.f32 %v822_v59, %v485_v57  ;;  %vm493_vm9 = vweird.f32 %v822_v59 }
 0x1c2   : > { %823 = vrcp.f32 %v486_v60  ;;  %vm494_vm11 = vmor %vm492_vm10, %vm493_vm9  ;;  %v513_v13 = vand.u32 2147483648, %v486_v60  ;;  %v511_v15 = vand.u32 2147483647, %v486_v60  ;;  %vm507_vm15 = vweird.f32 %v486_v60 }
 0x1c3   : > { %v489_v62 = vsub.f32 1.0, %v488_v61 }
 0x1c4   : > { %v514_v18 = vor.u32 1.1754944e-38, %v513_v13  ;;  %vm512_vm1 = vcmp.eq.f32.partialorder %v511_v15, 8.507059e+37 }
 0x1c5   : > { %v490_v2 = vmul.f32 %v822_v59, %v489_v62 }
 0x1c7   : > { %v491_v4 = vadd.f32 %v822_v59, %v490_v2 }
 0x1c8   : > { %v824_v5 = vpop.eup %823 }
 0x1c9   : > { %v495_v8 = vsel %vm494_vm11, %v822_v59, %v491_v4  ;;  %v503_v9 = vmul.f32 %v824_v5, %v486_v60  ;;  %vm508_vm14 = vweird.f32 %v824_v5 }
 0x1ca   : > { %v500_v10 = vsel %vm497_vm12, %v499_v6, %v495_v8  ;;  %vm509_vm0 = vmor %vm507_vm15, %vm508_vm14 }
 0x1cb   : > { %v517_v11 = vmul.f32 %v500_v10, %v441_v7  ;;  %v504_v12 = vsub.f32 1.0, %v503_v9 }
 0x1cd   : > { %523 = vst.msk [vmem:[#allocation2 + $0x1] sm:$0xff] %vm522_vm13, %v517_v11  ;;  %v505_v14 = vmul.f32 %v824_v5, %v504_v12 }
 0x1cf   : > { %v506_v17 = vadd.f32 %v824_v5, %v505_v14 }
 0x1d1   : > { %v510_v20 = vsel %vm509_vm0, %v824_v5, %v506_v17 }
 0x1d2   : > { %v515_v21 = vsel %vm512_vm1, %v514_v18, %v510_v20 }
 0x1d3   : > { %v518_v23 = vmul.f32 %v515_v21, %v443_v19 }
 0x1d4   : > { %v526_v26 = vld [vmem:[#allocation2] sm:$0xff] }
 0x1d5   : > { %524 = vst.msk [vmem:[#allocation2 + $0x9] sm:$0xff] %vm522_vm13, %v518_v23  ;;  %v533_v27 = vld [vmem:[#allocation2 + $0x1] sm:$0xff]  ;;  %v529_v28 = vmul.f32 %v528_v24, %v526_v26 }
 0x1d6   : > { %v536_v29 = vmul.f32 %v535_v25, %v533_v27 }
 0x1d8   : > { %v538_v36 = vadd.f32 %v536_v29, %v529_v28 }
 0x1dc   : > { %v527_v31 = vld [vmem:[#allocation2 + $0x8] sm:$0xff] }
 0x1dd   : > { %v534_v32 = vld [vmem:[#allocation2 + $0x9] sm:$0xff]  ;;  %v530_v34 = vmul.f32 %v528_v24, %v527_v31 }
 0x1de   : > { %v540_v33 = vld [vmem:[#allocation2 + $0x2] sm:$0xff]  ;;  %v537_v35 = vmul.f32 %v535_v25, %v534_v32  ;;  %v541_v37 = vld [vmem:[#allocation2 + $0xa] sm:$0xff] }
 0x1df   : > { %v543_v38 = vmul.f32 %v542_v30, %v540_v33  ;;  %v544_v41 = vmul.f32 %v542_v30, %v541_v37 }
 0x1e0   : > { %v539_v40 = vadd.f32 %v537_v35, %v530_v34 }
 0x1e1   : > { %v545_v42 = vadd.f32 %v543_v38, %v538_v36 }
 0x1e2   : > { %v546_v43 = vadd.f32 %v544_v41, %v539_v40 }
 0x1e3   : > { %v551_v44 = vadd.f32 %v810_v39, %v545_v42 }
 0x1e4   : > { %v552_v45 = vadd.f32 %v810_v39, %v546_v43 }
 0x1e5   : > { %v553_v46 = vpack.c.bf16 %v551_v44, %v551_v44  ;;  %v568_v47 = vmul.f32 %v551_v44, %v551_v44  ;;  %v558_v49 = vsel %vm522_vm13, %v551_v44, 0.0 }
 0x1e6   : > { %v554_v48 = vpack.c.bf16 %v552_v45, %v552_v45  ;;  %v559_v50 = vsel %vm522_vm13, %v552_v45, 0.0  ;;  %v569_v51 = vmul.f32 %v552_v45, %v552_v45 }
 0x1e7   : > { %556 = vst.msk [vmem:[%s351_s23] sm:$0xf] %vm555_vm2, %v553_v46  ;;  %v560_v52 = vadd.f32 %v559_v50, %v558_v49  ;;  %v570_v53 = vsel %vm522_vm13, %v568_v47, 0.0 }
 0x1e8   : > { %557 = vst.msk [vmem:[%s351_s23 + $0x4] sm:$0xf] %vm555_vm2, %v554_v48  ;;  %v571_v54 = vsel %vm522_vm13, %v569_v51, 0.0  ;;  %s1088_s23 = sshll.u32 %s341_s22, 4  ;;  %s617_s23 = int_to_ptr.vmem [resolvable:$true] %s1088_s23 }
 0x1e9   : > { %v561_v55 = vrot.slane %v560_v52, 4  ;;  %v572_v56 = vadd.f32 %v571_v54, %v570_v53 }
 0x1eb   : > { %v562_v57 = vadd.f32 %v561_v55, %v560_v52  ;;  %v573_v58 = vrot.slane %v572_v56, 4 }
 0x1ed   : > { %v563_v59 = vrot.slane %v562_v57, 2  ;;  %v574_v60 = vadd.f32 %v573_v58, %v572_v56 }
 0x1ef   : > { %v564_v61 = vadd.f32 %v563_v59, %v562_v57  ;;  %v575_v62 = vrot.slane %v574_v60, 2 }
 0x1f1   : > { %v565_v63 = vrot.slane %v564_v61, 1  ;;  %v576_v0 = vadd.f32 %v575_v62, %v574_v60 }
 0x1f3   : > { %v566_v1 = vadd.f32 %v565_v63, %v564_v61  ;;  %v577_v2 = vrot.slane %v576_v0, 1 }
 0x1f5   : > { %567 = vst.msk [vmem:[%s335_s14] sm:$0x1] %vm519_vm8, %v566_v1  ;;  %v578_v3 = vadd.f32 %v577_v2, %v576_v0 }
 0x1f6   : > { %852 = shalt.err (!%p849_p3)
}
 0x1f7   : > { %762 = dma.vmem_to_hbm [thread:$0]  (%p1011_p5), %s604_s16, 16, %s606_s17, %s586_s13   ;;  %579 = vst.msk [vmem:[%s341_s22] sm:$0x1] %vm519_vm8, %v578_v3 }
 0x1f8   : > { %s590_s14 = scalar_lea.sflag [#allocation6], %s1072_s21  ;;  %s867_s27 = sshra.s32 %s619_s24, 4  ;;  %s868_s27 = int_to_ptr.hbm [resolvable:$true] %s867_s27 }
 0x1f9   : > { %s869_s28 = scalar_lea.hbm %s868_s27, 1  ;;  %s873_s25 = scalar_lea.hbm %s1152_s9, 2 }
 0x1fa   : > { %p870_p4 = scmp.ne.s32.totalorder %s868_s27, %s869_s28  ;;  %p874_p9 = scmp.lt.s32.totalorder %s868_s27, %s1152_s9 }
 0x1fb   : > { %p875_p10 = scmp.lt.s32.totalorder %s873_s25, %s869_s28 }
 0x1fc   : > { %p871_p7 = pnand %p870_p4, %p1011_p5 }
 0x1fd   : > { %p876_p11 = por %p875_p10, %p874_p9 }
 0x1fe   : > { %p872_p8 = pneg %p871_p7 }
 0x200   : > { %p877_p12 = pnand %p876_p11, %p872_p8 }
 0x202   : > { %880 = shalt.err (!%p877_p12)
}
 0x203   : > { %763 = dma.vmem_to_hbm [thread:$0]  (%p1011_p5), %s617_s23, 16, %s619_s24, %s590_s14  }
 0x204 PF: > { %p773_p13 = scmp.ge.s32.totalorder %s919_s12, 2  ;;  %s638_s21 = sand.u32 1, %s907_s30  }
 0x205   : > { %s639_s16 = scalar_lea.sflag [#allocation4], %s638_s21 }
 0x206   : > { %p767_p0 = pnand %p773_p13, %p1015_p6 }
 0x208   : > { %p768_p1 = pneg %p767_p0 }
 0x20a   : > { %898 = dma.done.wait (%p768_p1), %s639_s16, 16  }
 0x20b   : > { %900 = vsyncadd (%p768_p1), %s639_s16, 4294967280  ;;  %s648_s17 = scalar_lea.sflag [#allocation6], %s638_s21 }
 0x20c   : > { %902 = dma.done.wait (%p768_p1), %s648_s17, 16  }
 0x20d   : > { %904 = vsyncadd (%p768_p1), %s648_s17, 4294967280  ;;  %p23_p5 = scmp.ge.s32.totalorder %s998_s15, 4   ;;  %s1159_s30 = smov %s911_s10 }
 0x20e   : > { %s1160_s10 = smov %s915_s11  ;;  %s1161_s11 = smov %s1009_s18 }
 0x20f   : > { %s1162_s12 = smov %s998_s15  ;;  %25 = sbr.rel (!%p23_p5) target bundleno = 8 (0x8), region = 112 }
 0x214   :  { %653 = vsyncpa [#allocation4], 1 }
 0x215   :  { %655 = vsyncpa [#allocation4 + $0x1], 1 }
 0x216   :  { %656 = vsyncpa [#allocation6], 1 }
 0x217   :  { %658 = vsyncpa [#allocation6 + $0x1], 1 }

</bundles_post_ra>
